<compile_context>
chip_gen: v5e
topology: v5e:2x2
jax: 0.10.0
libtpu: 0.0.40
codegen_flags: <defaults>
</compile_context>

<pallas_src>
import functools
import math

import jax
import jax.numpy as jnp
from jax import lax
from jax.experimental import pallas as pl
from jax.experimental.pallas import tpu as pltpu


# ----------------------------- small helpers --------------------------------

def _round_up(x, m):
    return ((x + m - 1) // m) * m


def _erf(x):
    # Abramowitz & Stegun 7.1.26 (max abs err ~1.5e-7); elementwise, exp -> EUP.
    a1, a2, a3, a4, a5 = (0.254829592, -0.284496736, 1.421413741,
                          -1.453152027, 1.061405429)
    p = 0.3275911
    sgn = jnp.where(x >= 0, 1.0, -1.0)
    z = jnp.abs(x)
    t = 1.0 / (1.0 + p * z)
    poly = ((((a5 * t + a4) * t + a3) * t + a2) * t + a1) * t
    return sgn * (1.0 - poly * jnp.exp(-z * z))


def _apply_act(x, act):
    """Mirrors ActivationLayer(act); 'gelu' is erf-based (nn.GELU default)."""
    if act == "relu":
        return jnp.maximum(x, 0.0)
    if act == "leaky":
        return jnp.where(x >= 0, x, 0.01 * x)
    if act == "leaky01":
        return jnp.where(x >= 0, x, 0.1 * x)
    if act == "relu6":
        return jnp.clip(x, 0.0, 6.0)
    if act == "gelu":
        return 0.5 * x * (1.0 + _erf(x * 0.7071067811865476))
    if act == "sin":
        return jnp.sin(x)
    if act == "swish":
        return x * jax.nn.sigmoid(x)
    if act == "softplus":
        return jnp.logaddexp(x, 0.0)
    if act == "hardswish":
        return x * jnp.clip(x + 3.0, 0.0, 6.0) * (1.0 / 6.0)
    raise KeyError(f"Unknown activation function {act}.")


@functools.lru_cache(maxsize=None)
def _vmem_budgets():
    """(strip budget, vmem_limit_bytes) chosen per TPU generation."""
    cap = None
    try:
        cap = int(getattr(pltpu.get_tpu_info(), "vmem_capacity_bytes"))
    except Exception:
        cap = None
    if not cap or cap <= 0:
        cap = 64 * 1024 * 1024                       # unknown -> assume v7x-class
    if cap >= 100 * 1024 * 1024:                     # v5e / v6e: 128 MiB VMEM
        return 72 * 1024 * 1024, 100 * 1024 * 1024
    return 15 * 1024 * 1024, 40 * 1024 * 1024        # v7x: 64 MiB VMEM


@functools.lru_cache(maxsize=None)
def _low_half_first():
    """Does bitcast_convert_type(u32 -> 16-bit) put the low bits at index 0?"""
    try:
        parts = jax.lax.bitcast_convert_type(
            jnp.array([0x00020001], dtype=jnp.uint32), jnp.uint16)
        return bool(parts[0, 0] == 1)
    except Exception:
        return True   # little-endian on all current TPU/XLA backends


def _choose_strip_rows(H, W, cin, new_ngf, s, packed, budget_bytes, prefer_split):
    """Largest row-strip TH (divisor of H) whose real per-step working set fits
    the budget; when prefer_split (batch 1) force >= 2 strips for megacore."""
    k_pad = _round_up(9 * cin, 16)
    c2_pad = _round_up(new_ngf * s, 8)
    cout_pad = _round_up(new_ngf * s * s, 8)

    def est(th):
        l_pad = _round_up(th * W, 128)
        if packed:
            w_rows, o_rows, o_bytes = s * c2_pad, c2_pad, 4
        else:
            w_rows, o_rows, o_bytes = cout_pad, cout_pad, 2
        return (2 * k_pad * l_pad * 2             # double-buffered bf16 patch
                + 2 * o_rows * l_pad * o_bytes    # double-buffered output block
                + w_rows * (k_pad * 2 + 4)        # resident weights + bias
                + w_rows * l_pad * 4              # f32 matmul accumulator
                + 6 * o_rows * l_pad * 4)         # act / rounding / pack temps

    divisors = [d for d in range(1, H + 1) if H % d == 0]
    fitting = [d for d in divisors if est(d) <= budget_bytes] or [1]
    th = max(fitting)
    if prefer_split and th == H:
        smaller = [d for d in fitting if d < H]
        if smaller:
            th = max(smaller)                     # >= 2 grid steps at batch 1
    return th


# ------------------- CustomConv + activation Pallas kernel ------------------

def custom_conv_act_forward(x_nchw, weight_oihw, bias, stride, act="gelu"):
    """act(PixelShuffle(stride)(Conv2d(Cin, Cout, 3, 1, 1)(x))), with the conv,
    bias, activation (and for stride==2 the width interleave of PixelShuffle)
    computed in one Pallas kernel.

    x_nchw      : (N, Cin, H, W)
    weight_oihw : (Cout, Cin, 3, 3), Cout = new_ngf * stride**2
    bias        : (Cout,)
    returns     : (N, new_ngf, H*stride, W*stride)   (NCHW, like PyTorch)
    """
    N, Cin, H, W = x_nchw.shape
    Cout = weight_oihw.shape[0]
    s = int(stride)
    new_ngf = Cout // (s * s)
    out_dtype = x_nchw.dtype

    packed = (s == 2)     # stride-2: fuse the width interleave by packing the
                          # (j=0, j=1) bf16 outputs of a width pair into one u32.
    budget, vmem_limit = _vmem_budgets()
    TH = _choose_strip_rows(H, W, Cin, new_ngf, s, packed, budget,
                            prefer_split=(N == 1))
    T = H // TH
    G = N * T

    K9 = 9 * Cin
    K_pad = _round_up(K9, 16)                     # bf16 sublane-pair aligned
    L = TH * W
    L_pad = _round_up(L, 128)                     # lane-dense output stores
    C2 = new_ngf * s
    C2_pad = _round_up(C2, 8)
    Cout_pad = _round_up(Cout, 8)

    # --- wrapper-side im2col: one fused XLA pass over the (small) input ------
    xb = x_nchw.astype(jnp.bfloat16)
    xp = jnp.pad(xb, ((0, 0), (0, 0), (1, 1), (1, 1)))
    taps = [xp[:, :, kh:kh + H, kw:kw + W] for kh in range(3) for kw in range(3)]
    pat = jnp.stack(taps, axis=1).reshape(N, K9, T, TH, W)    # rows (kh, kw, ci)
    pat = jnp.transpose(pat, (0, 2, 1, 3, 4)).reshape(G, K9, L)
    pat = jnp.pad(pat, ((0, 0), (0, K_pad - K9), (0, L_pad - L)))

    # --- weight / bias slabs (contiguous, VMEM-resident across the grid) -----
    if packed:
        a_low = _low_half_first()
        # rows ordered (j, c, i): the kernel slices the j=0 / j=1 row planes and
        # packs them per-lane, so output lanes are already final-width ordered.
        wr = weight_oihw.reshape(new_ngf, s, s, Cin, 3, 3)     # (c, i, j, ci, kh, kw)
        wr = jnp.transpose(wr, (2, 0, 1, 4, 5, 3)).reshape(s, C2, K9)
        wr = jnp.pad(wr, ((0, 0), (0, C2_pad - C2), (0, K_pad - K9)))
        wm = wr.reshape(s * C2_pad, K_pad).astype(jnp.bfloat16)
        br = jnp.transpose(bias.reshape(new_ngf, s, s), (2, 0, 1)).reshape(s, C2)
        br = jnp.pad(br, ((0, 0), (0, C2_pad - C2)))
        b2 = br.reshape(s * C2_pad, 1).astype(jnp.float32)
        out_rows = C2_pad
        kern_out_dtype = jnp.uint32
    else:
        wr = jnp.transpose(weight_oihw, (0, 2, 3, 1)).reshape(Cout, K9)
        wm = jnp.pad(wr, ((0, Cout_pad - Cout), (0, K_pad - K9))).astype(jnp.bfloat16)
        b2 = jnp.pad(bias, (0, Cout_pad - Cout)).reshape(Cout_pad, 1)
        b2 = b2.astype(jnp.float32)
        out_rows = Cout_pad
        kern_out_dtype = jnp.bfloat16

    w_rows = wm.shape[0]

    def kernel(p_ref, w_ref, b_ref, o_ref):
        # ONE im2col matmul on the MXU, bf16 operands, f32 accumulation.
        acc = jnp.dot(w_ref[...], p_ref[0],
                      preferred_element_type=jnp.float32)       # (w_rows, L_pad)
        acc = _apply_act(acc + b_ref[...], act)                 # bias + activation
        if packed:
            # round to bf16 and pack the (j=0, j=1) width pair into one u32 lane
            # (bf16 -> f32 is exact with the bf16 bits in the high half).
            a = pltpu.bitcast(
                acc[:C2_pad].astype(jnp.bfloat16).astype(jnp.float32), jnp.uint32)
            b = pltpu.bitcast(
                acc[C2_pad:].astype(jnp.bfloat16).astype(jnp.float32), jnp.uint32)
            if a_low:
                o_ref[0] = (a >> 16) | b        # j=0 in low 16 bits, j=1 in high
            else:
                o_ref[0] = a | (b >> 16)        # (only if bitcast split is high-first)
        else:
            o_ref[0] = acc.astype(o_ref.dtype)

    conv = pl.pallas_call(
        kernel,
        out_shape=jax.ShapeDtypeStruct((G, out_rows, L_pad), kern_out_dtype),
        grid_spec=pltpu.PrefetchScalarGridSpec(
            num_scalar_prefetch=0,
            grid=(G,),                                          # flattened N*T
            in_specs=[
                pl.BlockSpec((1, K_pad, L_pad), lambda g: (g, 0, 0)),
                pl.BlockSpec((w_rows, K_pad), lambda g: (0, 0)),   # VMEM-resident
                pl.BlockSpec((w_rows, 1), lambda g: (0, 0)),       # VMEM-resident
            ],
            out_specs=pl.BlockSpec((1, out_rows, L_pad), lambda g: (g, 0, 0)),
        ),
        compiler_params=pltpu.CompilerParams(
            dimension_semantics=("parallel",),
            vmem_limit_bytes=vmem_limit,
        ),
    )(pat, wm, b2)

    # --- epilogue: lane-dense only (no minor-dim-2 writes) -------------------
    if packed:
        y = conv.reshape(N, T, C2_pad, L_pad)[:, :, :C2, :L]
        y = y.reshape(N, T, new_ngf, s, TH, W)                  # rows (c, i)
        y = jnp.transpose(y, (0, 2, 1, 4, 3, 5))                # (N,c,T,TH,i,W) u32
        y = lax.bitcast_convert_type(y, jnp.bfloat16)           # (...,W,2)=(w,j) free
        y = y.reshape(N, new_ngf, H * s, W * s)
    else:
        # TODO(synk): for stride != 2 the width interleave is left to a single
        # XLA transpose; a strided in-kernel store could fuse it as well.
        y = conv.reshape(N, T, Cout_pad, L_pad)[:, :, :Cout, :L]
        y = y.reshape(N, T, new_ngf, s, s, TH, W)
        y = jnp.transpose(y, (0, 2, 1, 5, 3, 6, 4))             # (N,c,T,TH,i,W,j)
        y = y.reshape(N, new_ngf, H * s, W * s)
    return y.astype(out_dtype)


# --------------------------- NervPlusBlock forward ---------------------------

def conv1x1_forward(x_nchw, weight_oihw, bias):
    """ConvBlock (proj): 1x1 conv == dense matmul, left to XLA."""
    w = weight_oihw[:, :, 0, 0]
    y = jnp.einsum("nchw,oc->nohw", x_nchw, w)
    return y + bias[None, :, None, None]


def nerv_plus_block_forward(x, params, *, stride, act="gelu"):
    """x = proj(x); res = x; x = rffn(nerv_block(gcnn(x))); x += bilinear(res)."""
    x = conv1x1_forward(x, params["proj_w"], params["proj_b"])
    res = x
    # TODO(synk): GatedCNNBlock is not defined in the provided source; identity.
    h = custom_conv_act_forward(x, params["conv_w"], params["conv_b"],
                                stride, act)      # CustomConv + act + Dropout(0.0)
    # TODO(synk): ResidualFFN is not defined in the provided source; identity.
    n, c, hs, ws = h.shape
    # TODO(synk): verify exact parity of jax.image.resize('bilinear') with
    # F.interpolate(mode='bilinear', align_corners=False); both use half-pixel
    # centers for upsampling.
    up = jax.image.resize(res, (n, c, hs, ws), method="bilinear")
    return h + up


# --------------------------------- params ------------------------------------

def _xavier_uniform(key, shape, dtype=jnp.float32):
    cout, cin, kh, kw = shape
    fan_in, fan_out = cin * kh * kw, cout * kh * kw
    bound = math.sqrt(6.0 / (fan_in + fan_out))
    return jax.random.uniform(key, shape, dtype, minval=-bound, maxval=bound)


def make_params(key, ngf, new_ngf, stride, dtype=jnp.float32):
    k1, k2 = jax.random.split(key)
    cout = new_ngf * stride * stride
    return {
        "proj_w": _xavier_uniform(k1, (new_ngf, ngf, 1, 1), dtype),
        "proj_b": jnp.zeros((new_ngf,), dtype),
        "conv_w": _xavier_uniform(k2, (cout, new_ngf, 3, 3), dtype),
        "conv_b": jnp.zeros((cout,), dtype),
    }


def _reference_conv_ps_act(x, w, b, stride, act):
    """XLA reference: conv(3x3, pad 1) + bias + act + PixelShuffle, with the
    same bf16-rounded operands as the kernel."""
    s = stride
    N, _, H, W = x.shape
    Cout = w.shape[0]
    new_ngf = Cout // (s * s)
    xq = x.astype(jnp.bfloat16).astype(jnp.float32)
    wq = w.astype(jnp.bfloat16).astype(jnp.float32)
    ref = lax.conv_general_dilated(xq, wq, (1, 1), ((1, 1), (1, 1)),
                                   dimension_numbers=("NCHW", "OIHW", "NCHW"))
    ref = _apply_act(ref + b[None, :, None, None], act)
    ref = ref.reshape(N, new_ngf, s, s, H, W)
    ref = jnp.transpose(ref, (0, 1, 4, 2, 5, 3)).reshape(N, new_ngf, H * s, W * s)
    return ref


if __name__ == "__main__":
    key = jax.random.PRNGKey(0)
    kx, kp, kb, kx2, kw2, kb2 = jax.random.split(key, 6)

    # --- NervPlusBlock config (stride=2 exercises the packed / fused path) ---
    ngf, new_ngf, stride, act = 4, 4, 2, "gelu"
    N, H, W = 2, 16, 16
    x = jax.random.normal(kx, (N, ngf, H, W), dtype=jnp.float32)
    params = make_params(kp, ngf, new_ngf, stride)
    cout = new_ngf * stride * stride

    # correctness of the fused CustomConv + bias + act + PixelShuffle stage
    xin = conv1x1_forward(x, params["proj_w"], params["proj_b"])
    b_test = 0.1 * jax.random.normal(kb, (cout,), dtype=jnp.float32)
    got = custom_conv_act_forward(xin, params["conv_w"], b_test, stride, act)
    ref = _reference_conv_ps_act(xin, params["conv_w"], b_test, stride, act)
    err = float(jnp.max(jnp.abs(got - ref)))
    assert bool(jnp.allclose(got, ref, rtol=5e-2, atol=5e-2)), f"stride=2 err={err}"

    # generic-stride path (stride=3, batch=1 -> forced strip split for megacore)
    x2 = jax.random.normal(kx2, (1, 2, 8, 8), dtype=jnp.float32)
    w2 = _xavier_uniform(kw2, (2 * 9, 2, 3, 3))
    b2 = 0.1 * jax.random.normal(kb2, (2 * 9,), dtype=jnp.float32)
    got2 = custom_conv_act_forward(x2, w2, b2, 3, act)
    ref2 = _reference_conv_ps_act(x2, w2, b2, 3, act)
    err2 = float(jnp.max(jnp.abs(got2 - ref2)))
    assert bool(jnp.allclose(got2, ref2, rtol=5e-2, atol=5e-2)), f"stride=3 err={err2}"

    # --- full NervPlusBlock forward -------------------------------------------
    fwd = jax.jit(functools.partial(nerv_plus_block_forward,
                                    stride=stride, act=act))
    out = jax.block_until_ready(fwd(x, params))
    assert out.shape == (N, new_ngf, H * stride, W * stride), out.shape
    print("KERNEL_OK")
</pallas_src>

<mosaic_0001>
module attributes {stable_mosaic.version = 11 : i64} {
  func.func @kernel(%arg0: i32, %arg1: memref<1x48x256xbf16, #tpu.memory_space<vmem>>, %arg2: memref<16x48xbf16, #tpu.memory_space<vmem>>, %arg3: memref<16x1xf32, #tpu.memory_space<vmem>>, %arg4: memref<1x8x256xi32, #tpu.memory_space<vmem>>) attributes {dimension_semantics = [#tpu.dimension_semantics<parallel>], iteration_bounds = array<i64: 2>, scalar_prefetch = 0 : i64, scratch_operands = 0 : i64, tpu.core_type = #tpu.core_type<tc>, window_params = [{transform_indices = @transform_0, window_bounds = array<i64: 1, 48, 256>}, {pipeline_mode = #tpu.pipeline_mode<synchronous>, transform_indices = @transform_1, window_bounds = array<i64: 16, 48>}, {pipeline_mode = #tpu.pipeline_mode<synchronous>, transform_indices = @transform_2, window_bounds = array<i64: 16, 1>}, {transform_indices = @transform_3, window_bounds = array<i64: 1, 8, 256>}]} {
    %c0 = arith.constant 0 : index
    %c0_0 = arith.constant 0 : index
    %0 = vector.load %arg2[%c0, %c0_0] : memref<16x48xbf16, #tpu.memory_space<vmem>>, vector<16x48xbf16>
    %c0_1 = arith.constant 0 : index
    %c0_2 = arith.constant 0 : index
    %c0_3 = arith.constant 0 : index
    %1 = vector.load %arg1[%c0_1, %c0_2, %c0_3] : memref<1x48x256xbf16, #tpu.memory_space<vmem>>, vector<1x48x256xbf16>
    %2 = vector.shape_cast %1 : vector<1x48x256xbf16> to vector<48x256xbf16>
    %cst = arith.constant dense<0.000000e+00> : vector<16x256xf32>
    %3 = tpu.matmul %0, %2, %cst {dimension_numbers = #tpu.dot_dimension_numbers<[1], [0], [0], [1], [0, 0, 1, 1], [], []>} : vector<16x48xbf16>, vector<48x256xbf16>, vector<16x256xf32> -> vector<16x256xf32>
    %c0_4 = arith.constant 0 : index
    %c0_5 = arith.constant 0 : index
    %4 = vector.load %arg3[%c0_4, %c0_5] : memref<16x1xf32, #tpu.memory_space<vmem>>, vector<16x1xf32>
    %5 = vector.broadcast %4 : vector<16x1xf32> to vector<16x256xf32>
    %6 = arith.addf %3, %5 : vector<16x256xf32>
    %cst_6 = arith.constant 5.000000e-01 : f32
    %7 = vector.broadcast %cst_6 : f32 to vector<16x256xf32>
    %8 = arith.mulf %7, %6 : vector<16x256xf32>
    %cst_7 = arith.constant 0.707106769 : f32
    %9 = vector.broadcast %cst_7 : f32 to vector<16x256xf32>
    %10 = arith.mulf %6, %9 : vector<16x256xf32>
    %cst_8 = arith.constant 0.000000e+00 : f32
    %11 = vector.broadcast %cst_8 : f32 to vector<16x256xf32>
    %12 = arith.cmpf oge, %10, %11 : vector<16x256xf32>
    %cst_9 = arith.constant 1.000000e+00 : f32
    %cst_10 = arith.constant -1.000000e+00 : f32
    %13 = vector.broadcast %cst_9 : f32 to vector<16x256xf32>
    %14 = vector.broadcast %cst_10 : f32 to vector<16x256xf32>
    %15 = arith.select %12, %13, %14 : vector<16x256xi1>, vector<16x256xf32>
    %16 = math.absf %10 : vector<16x256xf32>
    %cst_11 = arith.constant 0.327591091 : f32
    %17 = vector.broadcast %cst_11 : f32 to vector<16x256xf32>
    %18 = arith.mulf %17, %16 : vector<16x256xf32>
    %cst_12 = arith.constant 1.000000e+00 : f32
    %19 = vector.broadcast %cst_12 : f32 to vector<16x256xf32>
    %20 = arith.addf %19, %18 : vector<16x256xf32>
    %cst_13 = arith.constant 1.000000e+00 : f32
    %21 = vector.broadcast %cst_13 : f32 to vector<16x256xf32>
    %22 = arith.divf %21, %20 : vector<16x256xf32>
    %cst_14 = arith.constant 1.06140542 : f32
    %23 = vector.broadcast %cst_14 : f32 to vector<16x256xf32>
    %24 = arith.mulf %23, %22 : vector<16x256xf32>
    %cst_15 = arith.constant -1.45315206 : f32
    %25 = vector.broadcast %cst_15 : f32 to vector<16x256xf32>
    %26 = arith.addf %24, %25 : vector<16x256xf32>
    %27 = arith.mulf %26, %22 : vector<16x256xf32>
    %cst_16 = arith.constant 1.42141378 : f32
    %28 = vector.broadcast %cst_16 : f32 to vector<16x256xf32>
    %29 = arith.addf %27, %28 : vector<16x256xf32>
    %30 = arith.mulf %29, %22 : vector<16x256xf32>
    %cst_17 = arith.constant -0.284496725 : f32
    %31 = vector.broadcast %cst_17 : f32 to vector<16x256xf32>
    %32 = arith.addf %30, %31 : vector<16x256xf32>
    %33 = arith.mulf %32, %22 : vector<16x256xf32>
    %cst_18 = arith.constant 0.254829586 : f32
    %34 = vector.broadcast %cst_18 : f32 to vector<16x256xf32>
    %35 = arith.addf %33, %34 : vector<16x256xf32>
    %36 = arith.mulf %35, %22 : vector<16x256xf32>
    %cst_19 = arith.constant 0.000000e+00 : f32
    %37 = vector.broadcast %cst_19 : f32 to vector<16x256xf32>
    %38 = arith.subf %37, %16 : vector<16x256xf32>
    %39 = arith.mulf %38, %16 : vector<16x256xf32>
    %40 = math.exp %39 : vector<16x256xf32>
    %41 = arith.mulf %36, %40 : vector<16x256xf32>
    %cst_20 = arith.constant 1.000000e+00 : f32
    %42 = vector.broadcast %cst_20 : f32 to vector<16x256xf32>
    %43 = arith.subf %42, %41 : vector<16x256xf32>
    %44 = arith.mulf %15, %43 : vector<16x256xf32>
    %cst_21 = arith.constant 1.000000e+00 : f32
    %45 = vector.broadcast %cst_21 : f32 to vector<16x256xf32>
    %46 = arith.addf %45, %44 : vector<16x256xf32>
    %47 = arith.mulf %8, %46 : vector<16x256xf32>
    %48 = vector.extract_strided_slice %47 {offsets = [0, 0], sizes = [8, 256], strides = [1, 1]} : vector<16x256xf32> to vector<8x256xf32>
    %49 = arith.truncf %48 : vector<8x256xf32> to vector<8x256xbf16>
    %50 = arith.extf %49 : vector<8x256xbf16> to vector<8x256xf32>
    %51 = tpu.bitcast %50 : vector<8x256xf32> -> vector<8x256xi32>
    %52 = vector.extract_strided_slice %47 {offsets = [8, 0], sizes = [8, 256], strides = [1, 1]} : vector<16x256xf32> to vector<8x256xf32>
    %53 = arith.truncf %52 : vector<8x256xf32> to vector<8x256xbf16>
    %54 = arith.extf %53 : vector<8x256xbf16> to vector<8x256xf32>
    %55 = tpu.bitcast %54 : vector<8x256xf32> -> vector<8x256xi32>
    %c16_i32 = arith.constant 16 : i32
    %56 = vector.broadcast %c16_i32 : i32 to vector<8x256xi32>
    %57 = arith.shrui %51, %56 : vector<8x256xi32>
    %58 = arith.ori %57, %55 : vector<8x256xi32>
    %c0_22 = arith.constant 0 : index
    %c0_23 = arith.constant 0 : index
    %c0_24 = arith.constant 0 : index
    %59 = vector.load %arg4[%c0_22, %c0_23, %c0_24] : memref<1x8x256xi32, #tpu.memory_space<vmem>>, vector<1x8x256xi32>
    %60 = vector.shape_cast %59 : vector<1x8x256xi32> to vector<8x256xi32>
    %61 = vector.shape_cast %58 : vector<8x256xi32> to vector<1x8x256xi32>
    tpu.vector_store %arg4[%c0_22, %c0_23, %c0_24], %61 {strides = array<i32>} : memref<1x8x256xi32, #tpu.memory_space<vmem>>, vector<1x8x256xi32>,
    return
  }
  func.func @transform_0(%arg0: i32) -> (i32, i32, i32) {
    %c0_i32 = arith.constant 0 : i32
    %c0_i32_0 = arith.constant 0 : i32
    %c0_i32_1 = arith.constant 0 : i32
    return %arg0, %c0_i32, %c0_i32_0 : i32, i32, i32
  }
  func.func @transform_1(%arg0: i32) -> (i32, i32) {
    %c0_i32 = arith.constant 0 : i32
    %c0_i32_0 = arith.constant 0 : i32
    %c0_i32_1 = arith.constant 0 : i32
    return %c0_i32, %c0_i32_0 : i32, i32
  }
  func.func @transform_2(%arg0: i32) -> (i32, i32) {
    %c0_i32 = arith.constant 0 : i32
    %c0_i32_0 = arith.constant 0 : i32
    %c0_i32_1 = arith.constant 0 : i32
    return %c0_i32, %c0_i32_0 : i32, i32
  }
  func.func @transform_3(%arg0: i32) -> (i32, i32, i32) {
    %c0_i32 = arith.constant 0 : i32
    %c0_i32_0 = arith.constant 0 : i32
    %c0_i32_1 = arith.constant 0 : i32
    return %arg0, %c0_i32, %c0_i32_0 : i32, i32, i32
  }
}

</mosaic_0001>

<bundles_post_ra>
// kernel: tpu_custom_call.1
= control target key start
LH: loop header
LB: loop body
LE: loop exit
PB: predicated region body
PF: predicated region fallthrough
CT: control target
= control target key end

     0   :  { %8 = vsyncpa [#allocation3], 0  ;;  %s967_s0 = inlined_call_operand.hbm [shape: bf16[2,48,256], index: 0, kind: input, shape index: {}]   ;;  %s968_s1 = inlined_call_operand.vmem [shape: bf16[16,48], index: 1, kind: input, shape index: {}]   ;;  %s969_s2 = inlined_call_operand.vmem [shape: f32[16,1], index: 2, kind: input, shape index: {}]   ;;  %s970_s3 = inlined_call_operand.hbm [shape: u32[2,8,256], index: 3, kind: output, shape index: {}]  }
   0x1   :  { %10 = vsyncpa [#allocation3 + $0x1], 0 }
   0x2   :  { %11 = vsyncpa [#allocation4], 0 }
   0x3   :  { %13 = vsyncpa [#allocation4 + $0x1], 0  ;;  %s783_s12 = smov 0   ;;  %s785_s13 = smov 0  }
   0x4   :  { %s787_s14 = smov 0   ;;  %s789_s15 = smov 0  }
   0x5 LB: > { %s804_s16 = sadd.s32 4294967295, %s757_s15   ;;  %s542_s17 = sadd.s32 4294967294, %s757_s15   ;;  %s757_s15 = sphi %s789_s15, %s978_s15   ;;  %s753_s14 = sphi %s787_s14, %s977_s14   ;;  %s749_s13 = sphi %s785_s13, %s976_s13   ;;  %s745_s12 = sphi %s783_s12, %s975_s12  }
   0x6   : > { %s808_s18 = sadd.s32 1, %s757_s15   ;;  %s26_s19 = sadd.s32 1, %s753_s14 }
   0x7   : > { %s23_s20 = ssub.s32 %s757_s15, %s808_s18  ;;  %p33_p0 = scmp.ne.s32.totalorder %s753_s14, %s749_s13 }
   0x8   : > { %p24_p1 = scmp.eq.s32.totalorder %s23_s20, 0  ;;  %p34_p2 = scmp.eq.s32.totalorder %s757_s15, 0 }
   0x9   : > { %p39_p3 = scmp.ne.s32.totalorder %s749_s13, %s745_s12  ;;  %p40_p4 = scmp.eq.s32.totalorder %s804_s16, 0 }
   0xa   : > { %s820_s21 = scalar_select %p24_p1, %s753_s14, %s26_s19  }
   0xb   : > { %p35_p5 = por %p34_p2, %p33_p0  ;;  %p822_p6 = por %p40_p4, %p39_p3 }
   0xc   : > { %p105_p7 = scmp.eq.s32.totalorder %s804_s16, 1  ;;  %p111_p8 = scmp.eq.s32.totalorder %s542_s17, 1 }
   0xd   : > { %p544_p9 = scmp.ge.s32.totalorder %s757_s15, 2  ;;  %p606_p10 = scmp.lt.s32.totalorder %s757_s15, 2 }
   0xe   : > { %p829_p11 = por %p105_p7, %p33_p0  ;;  %p833_p12 = por %p111_p8, %p39_p3 }
   0xf   : > { %s137_s25 = sand.u32 1, %s753_s14   ;;  %s592_s26 = smul.u32 48, %s757_s15 }
  0x10   : > { %s591_s27 = smul.u32 48, %s137_s25  ;;  %p842_p13 = pnand %p606_p10, %p35_p5 }
  0x11   : > { %s146_s30 = scalar_lea.hbm %s967_s0, %s592_s26  ;;  %s138_s8 = scalar_lea.sflag [#allocation3], %s137_s25 }
  0x12   : > { %s147_s5 = sshll.u32 %s146_s30, 4  ;;  %s141_s6 = scalar_lea.vmem [#allocation2], %s591_s27  ;;  %s148_s5 = int_to_ptr.hbm [resolvable:$true] %s147_s5 }
  0x13   : > { %s149_s7 = sshll.u32 %s141_s6, 4  ;;  %s661_s9 = sshra.s32 %s148_s5, 4  ;;  %s150_s7 = int_to_ptr.vmem [resolvable:$true] %s149_s7  ;;  %s662_s9 = int_to_ptr.hbm [resolvable:$true] %s661_s9 }
  0x14   : > { %s663_s10 = scalar_lea.hbm %s662_s9, 48  ;;  %p665_p1 = pneg %p842_p13 }
  0x15   : > { %p664_p0 = scmp.ne.s32.totalorder %s662_s9, %s663_s10  ;;  %s668_s19 = scalar_lea.hbm %s967_s0, 96 }
  0x16   : > { %p669_p4 = scmp.lt.s32.totalorder %s662_s9, %s967_s0  ;;  %p670_p5 = scmp.lt.s32.totalorder %s668_s19, %s663_s10 }
  0x17   : > { %p666_p2 = pnand %p665_p1, %p664_p0 }
  0x18   : > { %p671_p7 = por %p670_p5, %p669_p4 }
  0x19   : > { %p667_p3 = pneg %p666_p2 }
  0x1b   : > { %p672_p8 = pnand %p671_p7, %p667_p3 }
  0x1d   : > { %675 = shalt.err (!%p672_p8)
}
  0x1e   : > { %s759_s25 = smov 128   ;;  %s760_s27 = smov 8  }
  0x1f   : > { %601 = dma.hbm_to_vmem [thread:$0]  (!%p842_p13), %s148_s5, 768, %s150_s7, %s138_s8, %s759_s25, %s759_s25, %s760_s27  }
  0x20   : > { %p546_p10 = scmp.ge.s32.totalorder %s757_s15, 1  ;;  %p157_p0 = scmp.lt.s32.totalorder %s757_s15, 3 }
  0x22   : > { %p158_p1 = pnand %p546_p10, %p157_p0 }
  0x23   : > { %s859_s28 = sand.u32 (!%p158_p1), 1, %s749_s13  }
  0x24   : > { %161 = sbr.rel (%p158_p1) target bundleno = 256 (0x100), region = 32  ;;  %s164_s30 = scalar_lea.sflag (!%p158_p1), [#allocation3], %s859_s28 }
  0x25   : > { %s593_s29 = smul.u32 (!%p158_p1), 48, %s859_s28 }
  0x27   : > { %s167_s6 = scalar_lea.vmem (!%p158_p1), [#allocation2], %s593_s29 }
  0x29   : > { %736 = dma.done.wait (%p822_p6), %s164_s30, 768  }
  0x2a   : > { %738 = vsyncadd (%p822_p6), %s164_s30, 4294966528  ;;  %v761_v0 = vmov 0   ;;  %v570_v1 = vld [vmem:[%s167_s6 + $0x20] sm:$0xf]  ;;  %v589_v2 = vld [vmem:[%s167_s6 + $0x24] sm:$0xf0] }
  0x2b   : > { %644 = vset.pattern.permute.xlu0 %v761_v0  ;;  %v588_v3 = vld [vmem:[%s167_s6 + $0x24] sm:$0xf]  ;;  %v571_v4 = vor.u32 %v589_v2, %v570_v1  ;;  %v572_v5 = vld [vmem:[%s167_s6 + $0x28] sm:$0xf0]  ;;  %v562_v6 = vld [vmem:[%s167_s6 + $0x10] sm:$0xf] }
  0x2c   : > { %v587_v7 = vld [vmem:[%s167_s6 + $0x14] sm:$0xf0]  ;;  %v575_v8 = vor.u32 %v588_v3, %v572_v5  ;;  %v586_v9 = vld [vmem:[%s167_s6 + $0x14] sm:$0xf]  ;;  %v564_v10 = vld [vmem:[%s167_s6 + $0x18] sm:$0xf0] }
  0x2d   : > { %256 = vmatpush.bf16.msra.mxu0 %v571_v4  ;;  %v563_v11 = vor.u32 %v587_v7, %v562_v6  ;;  %v567_v12 = vor.u32 %v586_v9, %v564_v10  ;;  %v554_v13 = vld [vmem:[%s167_s6] sm:$0xf]  ;;  %v585_v14 = vld [vmem:[%s167_s6 + $0x4] sm:$0xf0]  ;;  %v584_v16 = vld [vmem:[%s167_s6 + $0x4] sm:$0xf] }
  0x2e   : > { %270 = vmatpush.bf16.msra.mxu1 %v575_v8  ;;  %v200_v15 = vld [vmem:[%s969_s2] sm:$0xff]  ;;  %v556_v17 = vld [vmem:[%s167_s6 + $0x8] sm:$0xf0]  ;;  %v555_v18 = vor.u32 %v585_v14, %v554_v13  ;;  %vm247_vm0 = vcmask 392192   ;;  %s547_s10 = sshll.u32 %s859_s28, 4  ;;  %s590_s11 = sshll.u32 %s804_s16, 4 }
  0x2f   : > { %204 = vperm.xlu0 %644, %v200_v15   ;;  %v559_v19 = vor.u32 %v584_v16, %v556_v17  ;;  %v583_v20 = vld [vmem:[%s968_s1] sm:$0xff]  ;;  %v201_v21 = vld [vmem:[%s969_s2 + $0x8] sm:$0xff]  ;;  %s467_s20 = scalar_lea.hbm %s970_s3, %s590_s11  ;;  %s190_s26 = scalar_lea.vmem [#allocation5], %s547_s10 }
  0x30   : > { %s469_s25 = sshll.u32 %s190_s26, 4  ;;  %s471_s27 = sshll.u32 %s467_s20, 4  ;;  %s470_s25 = int_to_ptr.vmem [resolvable:$true] %s469_s25  ;;  %s472_s27 = int_to_ptr.hbm [resolvable:$true] %s471_s27 }
  0x31   : > { %257 = vmatpush.bf16.msra.mxu0 %v563_v11  ;;  %s456_s16 = scalar_lea.sflag [#allocation4], %s859_s28  ;;  %s705_s29 = sshra.s32 %s472_s27, 4  ;;  %s706_s29 = int_to_ptr.hbm [resolvable:$true] %s705_s29 }
  0x32   : > { %271 = vmatpush.bf16.msra.mxu1 %v567_v12  ;;  %s707_s30 = scalar_lea.hbm %s706_s29, 16  ;;  %s711_s4 = scalar_lea.hbm %s970_s3, 32 }
  0x33   : > { %p708_p6 = scmp.ne.s32.totalorder %s706_s29, %s707_s30  ;;  %p712_p3 = scmp.lt.s32.totalorder %s706_s29, %s970_s3 }
  0x34   : > { %p713_p4 = scmp.lt.s32.totalorder %s711_s4, %s707_s30 }
  0x35   : > { %258 = vmatpush.bf16.msra.mxu0 %v555_v18  ;;  %p709_p13 = pnand %p708_p6, %p829_p11 }
  0x36   : > { %272 = vmatpush.bf16.msra.mxu1 %v559_v19  ;;  %p714_p5 = por %p713_p4, %p712_p3 }
  0x37   : > { %209 = vperm.xlu0 %644, %v201_v21   ;;  %p710_p2 = pneg %p709_p13 }
  0x38   : > { %576 = vmatmul.msk.bf16.vlgmr.msra.gmra.mxu0 %vm247_vm0, %v583_v20 }
  0x39   : > { %577 = vmatmul.msk.bf16.vlgmr.msra.gmra.mxu1 %vm247_vm0, %v583_v20  ;;  %p715_p7 = pnand %p714_p5, %p710_p2 }
  0xa1   : > { %v205_v22 = vpop.permute.xlu0 %204 }
  0xa9   : > { %v210_v34 = vpop.permute.xlu0 %209 }
  0xb5   : > { %v260_v23 = vpop.f32.mrf.mxu0 }
  0xb6   : > { %v876_v24 = vadd.f32 %v260_v23, %v205_v22  ;;  %v274_v25 = vpop.f32.mrf.mxu1 }
  0xb7   : > { %v878_v26 = vadd.f32 %v274_v25, %v205_v22 }
  0xb8   : > { %v881_v27 = vmul.f32 0.70710677, %v876_v24 }
  0xb9   : > { %v884_v28 = vmul.f32 0.70710677, %v878_v26 }
  0xba   : > { %v295_v29 = vand.u32 2147483647, %v881_v27 }
  0xbb   : > { %v296_v30 = vand.u32 2147483647, %v884_v28 }
  0xbc   : > { %v299_v31 = vmul.f32 0.3275911, %v295_v29  ;;  %v403_v42 = vsub.f32 0.0, %v295_v29 }
  0xbd   : > { %v300_v32 = vmul.f32 0.3275911, %v296_v30  ;;  %v262_v33 = vpop.f32.mrf.mxu0  ;;  %v404_v53 = vsub.f32 0.0, %v296_v30 }
  0xbe   : > { %v303_v35 = vadd.f32 1.0, %v299_v31  ;;  %v276_v36 = vpop.f32.mrf.mxu1  ;;  %v888_v38 = vadd.f32 %v262_v33, %v210_v34  ;;  %v407_v52 = vmul.f32 %v403_v42, %v295_v29 }
  0xbf   : > { %v304_v37 = vadd.f32 1.0, %v300_v32  ;;  %v890_v39 = vadd.f32 %v276_v36, %v210_v34  ;;  %v408_v4 = vmul.f32 %v404_v53, %v296_v30 }
  0xc0   : > { %645 = vrcp.f32 %v303_v35  ;;  %v893_v40 = vmul.f32 0.70710677, %v888_v38  ;;  %v316_v55 = vand.u32 2147483647, %v303_v35  ;;  %v318_v56 = vand.u32 2147483648, %v303_v35 }
  0xc1   : > { %647 = vrcp.f32 %v304_v37  ;;  %v896_v41 = vmul.f32 0.70710677, %v890_v39  ;;  %v333_v60 = vand.u32 2147483648, %v304_v37  ;;  %v331_v62 = vand.u32 2147483647, %v304_v37 }
  0xc2   : > { %v899_v43 = vand.u32 2147483647, %v893_v40  ;;  %vm312_vm3 = vweird.f32 %v303_v35  ;;  %v319_v0 = vor.u32 1.1754944e-38, %v318_v56  ;;  %vm327_vm5 = vweird.f32 %v304_v37 }
  0xc3   : > { %v902_v45 = vand.u32 2147483647, %v896_v41  ;;  %vm317_vm6 = vcmp.eq.f32.partialorder %v316_v55, 8.507059e+37  ;;  %v334_v3 = vor.u32 1.1754944e-38, %v333_v60  ;;  %v411_v6 = vmul.f32 1.442695, %v407_v52 }
  0xc4   : > { %v301_v48 = vmul.f32 0.3275911, %v899_v43  ;;  %vm332_vm8 = vcmp.eq.f32.partialorder %v331_v62, 8.507059e+37  ;;  %v413_v17 = vmul.f32 1.442695, %v408_v4 }
  0xc5   : > { %v302_v50 = vmul.f32 0.3275911, %v902_v45  ;;  %v406_v55 = vsub.f32 0.0, %v902_v45 }
  0xc6   : > { %v646_v44 = vpop.eup %645  ;;  %v906_v54 = vadd.f32 1.0, %v301_v48 }
  0xc7   : > { %v648_v46 = vpop.eup %647  ;;  %v308_v47 = vmul.f32 %v646_v44, %v303_v35  ;;  %v908_v58 = vadd.f32 1.0, %v302_v50  ;;  %vm313_vm1 = vweird.f32 %v646_v44  ;;  %v405_v35 = vsub.f32 0.0, %v899_v43 }
  0xc8   : > { %v323_v49 = vmul.f32 %v648_v46, %v304_v37  ;;  %649 = vrcp.f32 %v906_v54  ;;  %vm328_vm2 = vweird.f32 %v648_v46  ;;  %vm314_vm4 = vmor %vm312_vm3, %vm313_vm1  ;;  %v346_v20 = vand.u32 2147483647, %v906_v54 }
  0xc9   : > { %v309_v51 = vsub.f32 1.0, %v308_v47  ;;  %651 = vrcp.f32 %v908_v58  ;;  %vm329_vm7 = vmor %vm327_vm5, %vm328_vm2  ;;  %v348_v21 = vand.u32 2147483648, %v906_v54  ;;  %v363_v29 = vand.u32 2147483648, %v908_v58 }
  0xca   : > { %v324_v57 = vsub.f32 1.0, %v323_v49  ;;  %653 = vpow2.f32 %v411_v6  ;;  %v361_v32 = vand.u32 2147483647, %v908_v58  ;;  %vm342_vm11 = vweird.f32 %v906_v54 }
  0xcb   : > { %v310_v59 = vmul.f32 %v646_v44, %v309_v51  ;;  %v349_v37 = vor.u32 1.1754944e-38, %v348_v21  ;;  %vm357_vm13 = vweird.f32 %v908_v58  ;;  %vm347_vm14 = vcmp.eq.f32.partialorder %v346_v20, 8.507059e+37 }
  0xcc   : > { %v325_v61 = vmul.f32 %v648_v46, %v324_v57  ;;  %v364_v48 = vor.u32 1.1754944e-38, %v363_v29  ;;  %vm362_vm0 = vcmp.eq.f32.partialorder %v361_v32, 8.507059e+37  ;;  %655 = vpow2.f32 %v413_v17 }
  0xcd   : > { %v311_v63 = vadd.f32 %v646_v44, %v310_v59  ;;  %vm287_vm1 = vcmp.ge.f32.partialorder %v881_v27, 0.0  ;;  %vm288_vm2 = vcmp.ge.f32.partialorder %v884_v28, 0.0  ;;  %v280_v32 = vmul.f32 0.5, %v878_v26 }
  0xce   : > { %v326_v1 = vadd.f32 %v648_v46, %v325_v61  ;;  %v650_v8 = vpop.eup %649  ;;  %v409_v61 = vmul.f32 %v405_v35, %v899_v43  ;;  %vm289_vm3 = vcmp.ge.f32.partialorder %v893_v40, 0.0  ;;  %v281_v26 = vmul.f32 0.5, %v888_v38 }
  0xcf   : > { %v315_v2 = vsel %vm314_vm4, %v646_v44, %v311_v63  ;;  %v652_v11 = vpop.eup %651  ;;  %v338_v13 = vmul.f32 %v650_v8, %v906_v54  ;;  %vm343_vm9 = vweird.f32 %v650_v8  ;;  %vm290_vm4 = vcmp.ge.f32.partialorder %v896_v41, 0.0 }
  0xd0   : > { %v320_v5 = vsel %vm317_vm6, %v319_v0, %v315_v2  ;;  %v330_v7 = vsel %vm329_vm7, %v648_v46, %v326_v1  ;;  %v353_v15 = vmul.f32 %v652_v11, %v908_v58  ;;  %vm358_vm10 = vweird.f32 %v652_v11  ;;  %vm344_vm12 = vmor %vm342_vm11, %vm343_vm9  ;;  %v654_v44 = vpop.eup %653 }
  0xd1   : > { %v367_v9 = vmul.f32 1.0614054, %v320_v5  ;;  %v335_v10 = vsel %vm332_vm8, %v334_v3, %v330_v7  ;;  %v339_v18 = vsub.f32 1.0, %v338_v13  ;;  %vm359_vm15 = vmor %vm357_vm13, %vm358_vm10  ;;  %v410_v1 = vmul.f32 %v406_v55, %v902_v45 }
  0xd2   : > { %v368_v12 = vmul.f32 1.0614054, %v335_v10  ;;  %v354_v22 = vsub.f32 1.0, %v353_v15  ;;  %v656_v7 = vpop.eup %655  ;;  %v282_v40 = vmul.f32 0.5, %v890_v39 }
  0xd3   : > { %v371_v14 = vadd.f32 -1.4531521, %v367_v9  ;;  %v340_v25 = vmul.f32 %v650_v8, %v339_v18  ;;  %v415_v9 = vmul.f32 1.442695, %v409_v61  ;;  %v417_v43 = vmul.f32 1.442695, %v410_v1 }
  0xd4   : > { %v372_v16 = vadd.f32 -1.4531521, %v368_v12  ;;  %v355_v31 = vmul.f32 %v652_v11, %v354_v22 }
  0xd5   : > { %v375_v19 = vmul.f32 %v371_v14, %v320_v5  ;;  %v341_v34 = vadd.f32 %v650_v8, %v340_v25  ;;  %657 = vpow2.f32 %v415_v9 }
  0xd6   : > { %v376_v23 = vmul.f32 %v372_v16, %v335_v10  ;;  %v356_v42 = vadd.f32 %v652_v11, %v355_v31  ;;  %v762_v16 = vmov -1.0   ;;  %659 = vpow2.f32 %v417_v43 }
  0xd7   : > { %v379_v30 = vadd.f32 1.4214138, %v375_v19  ;;  %v345_v47 = vsel %vm344_vm12, %v650_v8, %v341_v34  ;;  %v291_v17 = vsel %vm287_vm1, 1.0, %v762_v16  ;;  %v279_v31 = vmul.f32 0.5, %v876_v24 }
  0xd8   : > { %v380_v33 = vadd.f32 1.4214138, %v376_v23  ;;  %v350_v50 = vsel %vm347_vm14, %v349_v37, %v345_v47  ;;  %v360_v51 = vsel %vm359_vm15, %v652_v11, %v356_v42 }
  0xd9   : > { %v383_v36 = vmul.f32 %v379_v30, %v320_v5  ;;  %v369_v53 = vmul.f32 1.0614054, %v350_v50  ;;  %v365_v54 = vsel %vm362_vm0, %v364_v48, %v360_v51 }
  0xda   : > { %v384_v46 = vmul.f32 %v380_v33, %v335_v10  ;;  %v370_v57 = vmul.f32 1.0614054, %v365_v54 }
  0xdb   : > { %v387_v49 = vadd.f32 -0.28449672, %v383_v36  ;;  %v373_v59 = vadd.f32 -1.4531521, %v369_v53  ;;  %v658_v30 = vpop.eup %657 }
  0xdc   : > { %v388_v52 = vadd.f32 -0.28449672, %v384_v46  ;;  %v374_v62 = vadd.f32 -1.4531521, %v370_v57  ;;  %v660_v34 = vpop.eup %659  ;;  %v293_v46 = vsel %vm289_vm3, 1.0, %v762_v16 }
  0xdd   : > { %v391_v56 = vmul.f32 %v387_v49, %v320_v5  ;;  %v377_v0 = vmul.f32 %v373_v59, %v350_v50  ;;  %v294_v49 = vsel %vm290_vm4, 1.0, %v762_v16 }
  0xde   : > { %v392_v58 = vmul.f32 %v388_v52, %v335_v10  ;;  %v378_v3 = vmul.f32 %v374_v62, %v365_v54 }
  0xdf   : > { %v395_v60 = vadd.f32 0.2548296, %v391_v56  ;;  %v381_v6 = vadd.f32 1.4214138, %v377_v0 }
  0xe0   : > { %v396_v63 = vadd.f32 0.2548296, %v392_v58  ;;  %v382_v11 = vadd.f32 1.4214138, %v378_v3 }
  0xe1   : > { %v399_v2 = vmul.f32 %v395_v60, %v320_v5  ;;  %v385_v13 = vmul.f32 %v381_v6, %v350_v50 }
  0xe2   : > { %v400_v4 = vmul.f32 %v396_v63, %v335_v10  ;;  %v386_v15 = vmul.f32 %v382_v11, %v365_v54  ;;  %v292_v10 = vsel %vm288_vm2, 1.0, %v762_v16 }
  0xe3   : > { %v419_v8 = vmul.f32 %v654_v44, %v399_v2  ;;  %v389_v5 = vadd.f32 -0.28449672, %v385_v13 }
  0xe4   : > { %v420_v12 = vmul.f32 %v656_v7, %v400_v4  ;;  %v390_v19 = vadd.f32 -0.28449672, %v386_v15 }
  0xe5   : > { %v423_v14 = vsub.f32 1.0, %v419_v8  ;;  %v393_v27 = vmul.f32 %v389_v5, %v350_v50 }
  0xe6   : > { %v424_v45 = vsub.f32 1.0, %v420_v12  ;;  %v394_v21 = vmul.f32 %v390_v19, %v365_v54 }
  0xe7   : > { %v427_v18 = vmul.f32 %v423_v14, %v291_v17  ;;  %v397_v22 = vadd.f32 0.2548296, %v393_v27 }
  0xe8   : > { %v428_v20 = vmul.f32 %v424_v45, %v292_v10  ;;  %v398_v25 = vadd.f32 0.2548296, %v394_v21 }
  0xe9   : > { %v431_v23 = vadd.f32 1.0, %v427_v18  ;;  %v401_v29 = vmul.f32 %v397_v22, %v350_v50 }
  0xea   : > { %v432_v28 = vadd.f32 1.0, %v428_v20  ;;  %v402_v33 = vmul.f32 %v398_v25, %v365_v54 }
  0xeb   : > { %v421_v35 = vmul.f32 %v658_v30, %v401_v29  ;;  %v435_v36 = vmul.f32 %v431_v23, %v279_v31 }
  0xec   : > { %v436_v37 = vmul.f32 %v432_v28, %v280_v32  ;;  %v422_v42 = vmul.f32 %v660_v34, %v402_v33 }
  0xed   : > { %v425_v44 = vsub.f32 1.0, %v421_v35 }
  0xee   : > { %v426_v47 = vsub.f32 1.0, %v422_v42  ;;  %v439_v24 = vpack.c.bf16 %v436_v37, %v435_v36 }
  0xef   : > { %v429_v48 = vmul.f32 %v425_v44, %v293_v46 }
  0xf0   : > { %v430_v50 = vmul.f32 %v426_v47, %v294_v49  ;;  %v440_v54 = vunpack.c.l.bf16 %v439_v24  ;;  %v441_v55 = vunpack.c.h.bf16 %v439_v24 }
  0xf1   : > { %v433_v51 = vadd.f32 1.0, %v429_v48 }
  0xf2   : > { %v434_v52 = vadd.f32 1.0, %v430_v50  ;;  %v449_v57 = vshrl.u32 %v440_v54, 16  ;;  %v450_v58 = vshrl.u32 %v441_v55, 16 }
  0xf3   : > { %v437_v53 = vmul.f32 %v433_v51, %v281_v26 }
  0xf4   : > { %v438_v41 = vmul.f32 %v434_v52, %v282_v40 }
  0xf6   : > { %v444_v56 = vpack.c.bf16 %v438_v41, %v437_v53 }
  0xf8   : > { %v445_v59 = vunpack.c.l.bf16 %v444_v56  ;;  %v446_v38 = vunpack.c.h.bf16 %v444_v56 }
  0xfa   : > { %v451_v39 = vor.u32 %v449_v57, %v445_v59  ;;  %v452_v60 = vor.u32 %v450_v58, %v446_v38 }
  0xfc   : > { %453 = vst [vmem:[%s190_s26] sm:$0xff] %v451_v39 }
  0xfd   : > { %454 = vst [vmem:[%s190_s26 + $0x8] sm:$0xff] %v452_v60 }
  0xfe   : > { %718 = shalt.err (!%p715_p7)
}
  0xff   : > { %596 = dma.vmem_to_hbm [thread:$0]  (%p829_p11), %s470_s25, 256, %s472_s27, %s456_s16  }
 0x100 PF: > { %s483_s28 = sand.u32 1, %s745_s12   ;;  %p603_p8 = pnand %p544_p9, %p833_p12 }
 0x101   : > { %s484_s8 = scalar_lea.sflag [#allocation4], %s483_s28 }
 0x102   : > { %p604_p10 = pneg %p603_p8 }
 0x104   : > { %740 = dma.done.wait (%p604_p10), %s484_s8, 256  }
 0x105   : > { %742 = vsyncadd (%p604_p10), %s484_s8, 4294967040  ;;  %p16_p0 = scmp.ge.s32.totalorder %s808_s18, 4   ;;  %s975_s12 = smov %s749_s13 }
 0x106   : > { %s976_s13 = smov %s753_s14  ;;  %s977_s14 = smov %s820_s21 }
 0x107   : > { %s978_s15 = smov %s808_s18  ;;  %18 = sbr.rel (!%p16_p0) target bundleno = 5 (0x5), region = 77 }
 0x10c   :  { %490 = vsyncpa [#allocation3], 1 }
 0x10d   :  { %492 = vsyncpa [#allocation3 + $0x1], 1 }
 0x10e   :  { %493 = vsyncpa [#allocation4], 1 }
 0x10f   :  { %495 = vsyncpa [#allocation4 + $0x1], 1 }

</bundles_post_ra>
